<compile_context>
chip_gen: v7x
topology: tpu7x:2x2x1
jax: 0.10.0
libtpu: 0.0.40
codegen_flags: <defaults>
</compile_context>

<pallas_src>
import functools

import jax
import jax.numpy as jnp
from jax import lax
from jax.experimental import pallas as pl
from jax.experimental.pallas import tpu as pltpu


def _round_up(x, m):
    return ((x + m - 1) // m) * m


def _pick_tile(n_pad, candidates):
    for c in candidates:
        if c <= n_pad and n_pad % c == 0:
            return c
    return min(n_pad, 128)


def _device_config():
    """Per-generation knobs: softmax exp dtype and scoped VMEM budget."""
    kind = ""
    try:
        kind = jax.devices()[0].device_kind.lower()
    except Exception:
        pass
    if any(v in kind for v in ("v2", "v3", "v4", "v5")):
        # no bf16 VPU/EUP on v5e and older -> keep softmax math f32;
        # 128 MiB physical VMEM -> generous scoped limit.
        return jnp.float32, 100 * 1024 * 1024
    if "v6" in kind:
        return jnp.bfloat16, 100 * 1024 * 1024
    # v7x (64 MiB VMEM / TC) or unknown: bf16 softmax, conservative VMEM.
    return jnp.bfloat16, 48 * 1024 * 1024


def _proj_kernel(patches_ref, pw_ref, pb_ref, wqk_ref, bqk_ref,
                 xp_ref, q_ref, k_ref, *, p2, cr_pad, tn, n_valid, n_pad):
    """Depthwise patch conv + fused 1x1-conv Q/K projection for one (b, n) tile."""
    # depthwise strided conv == per-channel weighted reduce over the P2 patch
    # planes; P2 is the leading axis -> plain VALU multiply-adds, N stays lanes.
    pw = pw_ref[...]                                              # (C_pad, P2) f32
    acc = None
    for t in range(p2):
        term = patches_ref[0, t].astype(jnp.float32) * pw[:, t:t + 1]   # (C_pad, TN)
        acc = term if acc is None else acc + term
    xp = acc + pb_ref[...]                                        # (C_pad, TN) f32
    if n_valid < n_pad:
        # zero padded columns so padded query rows never contribute to the output
        col = pl.program_id(1) * tn + lax.broadcasted_iota(jnp.int32, xp.shape, 1)
        xp = jnp.where(col < n_valid, xp, 0.0)
    xp_lp = xp.astype(xp_ref.dtype)
    xp_ref[0] = xp_lp

    # fused 1x1 Conv1d query + key: one MXU pass over x_patch, then split rows.
    qk = jnp.dot(wqk_ref[...], xp_lp,
                 preferred_element_type=jnp.float32) + bqk_ref[...]   # (2*Cr_pad, TN)
    qk = qk.astype(q_ref.dtype)
    q_ref[0] = qk[:cr_pad]
    k_ref[0] = qk[cr_pad:]


def _attn_kernel(q_ref, k_ref, xp_ref, gamma_ref, out_ref,
                 *, n_valid, n_pad, mxu_dtype, exp_dtype):
    """One (TM, N_pad) tile of attention rows, accumulated into the resident output."""
    m_idx = pl.program_id(1)

    q = q_ref[0]                                                  # (Cr_pad, TM)
    k = k_ref[0]                                                  # (Cr_pad, N_pad)
    # energy = q^T @ k; the transpose is consumed by the MXU (contract axis 0 of both)
    energy = lax.dot_general(q, k, dimension_numbers=(((0,), (0,)), ((), ())),
                             preferred_element_type=jnp.float32)  # (TM, N_pad) f32
    if n_valid < n_pad:
        # mask padded key columns out of the softmax (compiles away when N % 128 == 0)
        col = lax.broadcasted_iota(jnp.int32, energy.shape, 1)
        energy = jnp.where(col < n_valid, energy, -1e30)

    row_max = jnp.max(energy, axis=-1, keepdims=True)             # (TM, 1) f32
    # un-normalised probabilities; exp in bf16 on v6e/v7x, f32 on v5e.
    p = jnp.exp((energy - row_max).astype(exp_dtype))             # (TM, N_pad)
    rowsum = jnp.sum(p.astype(jnp.float32), axis=-1, keepdims=True)   # f32 accumulation
    inv = pl.reciprocal(rowsum, approx=True)                      # (TM, 1)

    # fold 1/rowsum and gamma into the small xp operand instead of rescaling
    # the (TM, N_pad) probability tile.
    scale = (gamma_ref[0, 0] * inv).reshape(1, -1)                # (1, TM) f32
    xp = xp_ref[0].astype(jnp.float32) * scale                    # (C_pad, TM)
    partial = jnp.dot(xp.astype(mxu_dtype), p.astype(mxu_dtype),
                      preferred_element_type=jnp.float32)         # (C_pad, N_pad)

    # skip the zero-init + first read-modify-write on step 0.
    @pl.when(m_idx == 0)
    def _first():
        out_ref[0] = partial

    @pl.when(m_idx > 0)
    def _rest():
        out_ref[0] += partial


def spatial_atten(x, params, patch_size, *, mxu_dtype=jnp.bfloat16,
                  exp_dtype=None, vmem_limit_bytes=None):
    B, C, H, W = x.shape
    p = patch_size
    assert H % p == 0 and W % p == 0, "H, W must be divisible by patch_size"
    Hp, Wp = H // p, W // p
    N = Hp * Wp
    P2 = p * p
    Cr = params["wq"].shape[0]

    if exp_dtype is None or vmem_limit_bytes is None:
        d_exp, d_vmem = _device_config()
        exp_dtype = d_exp if exp_dtype is None else exp_dtype
        vmem_limit_bytes = d_vmem if vmem_limit_bytes is None else vmem_limit_bytes

    # hardware-friendly padding: lanes (N) to 128, sublanes (C, Cr) to 16 (bf16-safe)
    C_pad = _round_up(C, 16)
    Cr_pad = _round_up(Cr, 16)
    N_pad = _round_up(N, 128)
    TN = _pick_tile(N_pad, (512, 256, 128))                        # projection N tile
    TM = _pick_tile(N_pad, (640, 512, 448, 384, 320, 256, 192, 128))  # query-row tile
    num_n = N_pad // TN
    num_m = N_pad // TM

    # non-overlapping patches in (B, P2, C, N) layout; bf16 cast fuses into the
    # XLA transpose so the materialised slab is half-size.
    patches = x.astype(mxu_dtype).reshape(B, C, Hp, p, Wp, p)
    patches = patches.transpose(0, 3, 5, 1, 2, 4).reshape(B, P2, C, N)
    patches = jnp.pad(patches, ((0, 0), (0, 0), (0, C_pad - C), (0, N_pad - N)))

    pw = jnp.pad(params["patch_w"].reshape(C, P2), ((0, C_pad - C), (0, 0)))
    pb = jnp.pad(params["patch_b"].reshape(C, 1), ((0, C_pad - C), (0, 0)))
    wq = jnp.pad(params["wq"], ((0, Cr_pad - Cr), (0, C_pad - C)))
    wk = jnp.pad(params["wk"], ((0, Cr_pad - Cr), (0, C_pad - C)))
    bq = jnp.pad(params["bq"].reshape(Cr, 1), ((0, Cr_pad - Cr), (0, 0)))
    bk = jnp.pad(params["bk"].reshape(Cr, 1), ((0, Cr_pad - Cr), (0, 0)))
    wqk = jnp.concatenate([wq, wk], axis=0).astype(mxu_dtype)   # (2*Cr_pad, C_pad)
    bqk = jnp.concatenate([bq, bk], axis=0)                     # (2*Cr_pad, 1) f32
    gamma = params["gamma"].reshape(1, 1).astype(jnp.float32)

    itemsize = jnp.dtype(mxu_dtype).itemsize

    # ---- kernel 1: depthwise patch conv + fused Q/K projection ----
    proj = functools.partial(_proj_kernel, p2=P2, cr_pad=Cr_pad, tn=TN,
                             n_valid=N, n_pad=N_pad)
    cost1 = pl.CostEstimate(
        flops=2 * B * N_pad * C_pad * (P2 + 2 * Cr_pad),
        transcendentals=0,
        bytes_accessed=(B * P2 * C_pad * N_pad * itemsize
                        + B * (C_pad + 2 * Cr_pad) * N_pad * itemsize
                        + C_pad * (P2 + 1) * 4
                        + 2 * Cr_pad * (C_pad * itemsize + 4)))
    x_patch, q, k = pl.pallas_call(
        proj,
        out_shape=(jax.ShapeDtypeStruct((B, C_pad, N_pad), mxu_dtype),
                   jax.ShapeDtypeStruct((B, Cr_pad, N_pad), mxu_dtype),
                   jax.ShapeDtypeStruct((B, Cr_pad, N_pad), mxu_dtype)),
        grid=(B, num_n),
        in_specs=[
            pl.BlockSpec((1, P2, C_pad, TN), lambda b, n: (b, 0, 0, n)),
            pl.BlockSpec((C_pad, P2), lambda b, n: (0, 0)),
            pl.BlockSpec((C_pad, 1), lambda b, n: (0, 0)),
            pl.BlockSpec((2 * Cr_pad, C_pad), lambda b, n: (0, 0)),
            pl.BlockSpec((2 * Cr_pad, 1), lambda b, n: (0, 0)),
        ],
        out_specs=(
            pl.BlockSpec((1, C_pad, TN), lambda b, n: (b, 0, n)),
            pl.BlockSpec((1, Cr_pad, TN), lambda b, n: (b, 0, n)),
            pl.BlockSpec((1, Cr_pad, TN), lambda b, n: (b, 0, n)),
        ),
        compiler_params=pltpu.CompilerParams(
            dimension_semantics=("parallel", "parallel"),
            vmem_limit_bytes=vmem_limit_bytes),
        cost_estimate=cost1,
    )(patches, pw, pb, wqk, bqk)

    # ---- kernel 2: blocked attention (query rows tiled, keys full, exact softmax) ----
    attn = functools.partial(_attn_kernel, n_valid=N, n_pad=N_pad,
                             mxu_dtype=mxu_dtype, exp_dtype=exp_dtype)
    cost2 = pl.CostEstimate(
        flops=2 * B * N_pad * N_pad * (Cr_pad + C_pad),
        transcendentals=B * N_pad * N_pad,
        bytes_accessed=(B * (C_pad + Cr_pad) * N_pad * itemsize
                        + B * num_m * Cr_pad * N_pad * itemsize
                        + B * C_pad * N_pad * 4))
    out = pl.pallas_call(
        attn,
        out_shape=jax.ShapeDtypeStruct((B, C_pad, N_pad), jnp.float32),
        grid=(B, num_m),
        in_specs=[
            pl.BlockSpec((1, Cr_pad, TM), lambda b, m: (b, 0, m)),       # q row tile
            pl.BlockSpec((1, Cr_pad, N_pad), lambda b, m: (b, 0, 0)),    # full keys
            pl.BlockSpec((1, C_pad, TM), lambda b, m: (b, 0, m)),        # x_patch cols
            pl.BlockSpec(memory_space=pltpu.MemorySpace.SMEM),           # gamma
        ],
        out_specs=pl.BlockSpec((1, C_pad, N_pad), lambda b, m: (b, 0, 0)),
        compiler_params=pltpu.CompilerParams(
            dimension_semantics=("parallel", "arbitrary"),
            vmem_limit_bytes=vmem_limit_bytes),
        cost_estimate=cost2,
    )(q, k, x_patch, gamma)

    # un-pad, reshape to the coarse grid, nearest-upsample back to (H, W)
    out = out[:, :C, :N].reshape(B, C, Hp, Wp)
    out = jnp.repeat(jnp.repeat(out, p, axis=2), p, axis=3)   # F.interpolate nearest
    return out


def spatial_atten_reference(x, params, patch_size):
    """Pure-JAX f32 reference mirroring the PyTorch forward."""
    B, C, H, W = x.shape
    p = patch_size
    Hp, Wp = H // p, W // p
    N = Hp * Wp

    patches = x.reshape(B, C, Hp, p, Wp, p).transpose(0, 1, 2, 4, 3, 5)
    pw = params["patch_w"].reshape(C, p, p)
    x_patch = jnp.einsum("bchwij,cij->bchw", patches, pw) + params["patch_b"][None, :, None, None]
    x_patch = x_patch.reshape(B, C, N)

    q = jnp.einsum("rc,bcn->brn", params["wq"], x_patch) + params["bq"][None, :, None]
    k = jnp.einsum("rc,bcn->brn", params["wk"], x_patch) + params["bk"][None, :, None]
    energy = jnp.einsum("brm,brn->bmn", q, k)
    attention = jax.nn.softmax(energy, axis=-1)
    out = jnp.einsum("bcm,bmn->bcn", x_patch, attention)
    out = out.reshape(B, C, Hp, Wp)
    out = jnp.repeat(jnp.repeat(out, p, axis=2), p, axis=3)
    return params["gamma"] * out


if __name__ == "__main__":
    B, C, H, W = 2, 4, 16, 16
    patch_size = 4
    reduction = 16
    Cr = max(4, C // reduction)

    key = jax.random.PRNGKey(0)
    ks = jax.random.split(key, 5)
    x = jax.random.normal(ks[0], (B, C, H, W), jnp.float32)

    params = {
        "patch_w": jax.random.normal(ks[1], (C, 1, patch_size, patch_size), jnp.float32) * 0.1,
        "patch_b": jax.random.normal(ks[2], (C,), jnp.float32) * 0.1,
        "wq": jax.random.normal(ks[3], (Cr, C), jnp.float32) * 0.1,
        "bq": jnp.zeros((Cr,), jnp.float32),
        "wk": jax.random.normal(ks[4], (Cr, C), jnp.float32) * 0.1,
        "bk": jnp.zeros((Cr,), jnp.float32),
        # gamma_init default is 0.0 (all-zero output); use 0.5 for a non-trivial check
        "gamma": jnp.array(0.5, jnp.float32),
    }

    out = spatial_atten(x, params, patch_size)
    out = jax.block_until_ready(out)

    ref = spatial_atten_reference(x, params, patch_size)
    assert out.shape == (B, C, H, W), out.shape
    # bf16 patches / MXU operands / (on v6e+v7x) bf16 exp + approx reciprocal
    # -> tolerance relaxed vs pure f32
    err = float(jnp.max(jnp.abs(out - ref)))
    assert err < 3e-2, err
    print("KERNEL_OK")
</pallas_src>

<mosaic_0001>
module attributes {stable_mosaic.version = 11 : i64} {
  func.func @_proj_kernel(%arg0: i32, %arg1: i32, %arg2: memref<1x16x16x128xbf16, #tpu.memory_space<vmem>>, %arg3: memref<16x16xf32, #tpu.memory_space<vmem>>, %arg4: memref<16x1xf32, #tpu.memory_space<vmem>>, %arg5: memref<32x16xbf16, #tpu.memory_space<vmem>>, %arg6: memref<32x1xf32, #tpu.memory_space<vmem>>, %arg7: memref<1x16x128xbf16, #tpu.memory_space<vmem>>, %arg8: memref<1x16x128xbf16, #tpu.memory_space<vmem>>, %arg9: memref<1x16x128xbf16, #tpu.memory_space<vmem>>) attributes {dimension_semantics = [#tpu.dimension_semantics<parallel>, #tpu.dimension_semantics<parallel>], iteration_bounds = array<i64: 2, 1>, scalar_prefetch = 0 : i64, scratch_operands = 0 : i64, tpu.core_type = #tpu.core_type<tc>, window_params = [{transform_indices = @transform_0, window_bounds = array<i64: 1, 16, 16, 128>}, {pipeline_mode = #tpu.pipeline_mode<synchronous>, transform_indices = @transform_1, window_bounds = array<i64: 16, 16>}, {pipeline_mode = #tpu.pipeline_mode<synchronous>, transform_indices = @transform_2, window_bounds = array<i64: 16, 1>}, {pipeline_mode = #tpu.pipeline_mode<synchronous>, transform_indices = @transform_3, window_bounds = array<i64: 32, 16>}, {pipeline_mode = #tpu.pipeline_mode<synchronous>, transform_indices = @transform_4, window_bounds = array<i64: 32, 1>}, {transform_indices = @transform_5, window_bounds = array<i64: 1, 16, 128>}, {transform_indices = @transform_6, window_bounds = array<i64: 1, 16, 128>}, {transform_indices = @transform_7, window_bounds = array<i64: 1, 16, 128>}]} {
    %c0 = arith.constant 0 : index
    %c0_0 = arith.constant 0 : index
    %0 = vector.load %arg3[%c0, %c0_0] : memref<16x16xf32, #tpu.memory_space<vmem>>, vector<16x16xf32>
    %c0_1 = arith.constant 0 : index
    %c0_2 = arith.constant 0 : index
    %c0_3 = arith.constant 0 : index
    %c0_4 = arith.constant 0 : index
    %1 = vector.load %arg2[%c0_1, %c0_2, %c0_3, %c0_4] : memref<1x16x16x128xbf16, #tpu.memory_space<vmem>>, vector<1x1x16x128xbf16>
    %2 = vector.shape_cast %1 : vector<1x1x16x128xbf16> to vector<16x128xbf16>
    %3 = arith.extf %2 : vector<16x128xbf16> to vector<16x128xf32>
    %4 = vector.extract_strided_slice %0 {offsets = [0, 0], sizes = [16, 1], strides = [1, 1]} : vector<16x16xf32> to vector<16x1xf32>
    %5 = vector.broadcast %4 : vector<16x1xf32> to vector<16x128xf32>
    %6 = arith.mulf %3, %5 : vector<16x128xf32>
    %c0_5 = arith.constant 0 : index
    %c1 = arith.constant 1 : index
    %c0_6 = arith.constant 0 : index
    %c0_7 = arith.constant 0 : index
    %7 = vector.load %arg2[%c0_5, %c1, %c0_6, %c0_7] : memref<1x16x16x128xbf16, #tpu.memory_space<vmem>>, vector<1x1x16x128xbf16>
    %8 = vector.shape_cast %7 : vector<1x1x16x128xbf16> to vector<16x128xbf16>
    %9 = arith.extf %8 : vector<16x128xbf16> to vector<16x128xf32>
    %10 = vector.extract_strided_slice %0 {offsets = [0, 1], sizes = [16, 1], strides = [1, 1]} : vector<16x16xf32> to vector<16x1xf32>
    %11 = vector.broadcast %10 : vector<16x1xf32> to vector<16x128xf32>
    %12 = arith.mulf %9, %11 : vector<16x128xf32>
    %13 = arith.addf %6, %12 : vector<16x128xf32>
    %c0_8 = arith.constant 0 : index
    %c2 = arith.constant 2 : index
    %c0_9 = arith.constant 0 : index
    %c0_10 = arith.constant 0 : index
    %14 = vector.load %arg2[%c0_8, %c2, %c0_9, %c0_10] : memref<1x16x16x128xbf16, #tpu.memory_space<vmem>>, vector<1x1x16x128xbf16>
    %15 = vector.shape_cast %14 : vector<1x1x16x128xbf16> to vector<16x128xbf16>
    %16 = arith.extf %15 : vector<16x128xbf16> to vector<16x128xf32>
    %17 = vector.extract_strided_slice %0 {offsets = [0, 2], sizes = [16, 1], strides = [1, 1]} : vector<16x16xf32> to vector<16x1xf32>
    %18 = vector.broadcast %17 : vector<16x1xf32> to vector<16x128xf32>
    %19 = arith.mulf %16, %18 : vector<16x128xf32>
    %20 = arith.addf %13, %19 : vector<16x128xf32>
    %c0_11 = arith.constant 0 : index
    %c3 = arith.constant 3 : index
    %c0_12 = arith.constant 0 : index
    %c0_13 = arith.constant 0 : index
    %21 = vector.load %arg2[%c0_11, %c3, %c0_12, %c0_13] : memref<1x16x16x128xbf16, #tpu.memory_space<vmem>>, vector<1x1x16x128xbf16>
    %22 = vector.shape_cast %21 : vector<1x1x16x128xbf16> to vector<16x128xbf16>
    %23 = arith.extf %22 : vector<16x128xbf16> to vector<16x128xf32>
    %24 = vector.extract_strided_slice %0 {offsets = [0, 3], sizes = [16, 1], strides = [1, 1]} : vector<16x16xf32> to vector<16x1xf32>
    %25 = vector.broadcast %24 : vector<16x1xf32> to vector<16x128xf32>
    %26 = arith.mulf %23, %25 : vector<16x128xf32>
    %27 = arith.addf %20, %26 : vector<16x128xf32>
    %c0_14 = arith.constant 0 : index
    %c4 = arith.constant 4 : index
    %c0_15 = arith.constant 0 : index
    %c0_16 = arith.constant 0 : index
    %28 = vector.load %arg2[%c0_14, %c4, %c0_15, %c0_16] : memref<1x16x16x128xbf16, #tpu.memory_space<vmem>>, vector<1x1x16x128xbf16>
    %29 = vector.shape_cast %28 : vector<1x1x16x128xbf16> to vector<16x128xbf16>
    %30 = arith.extf %29 : vector<16x128xbf16> to vector<16x128xf32>
    %31 = vector.extract_strided_slice %0 {offsets = [0, 4], sizes = [16, 1], strides = [1, 1]} : vector<16x16xf32> to vector<16x1xf32>
    %32 = vector.broadcast %31 : vector<16x1xf32> to vector<16x128xf32>
    %33 = arith.mulf %30, %32 : vector<16x128xf32>
    %34 = arith.addf %27, %33 : vector<16x128xf32>
    %c0_17 = arith.constant 0 : index
    %c5 = arith.constant 5 : index
    %c0_18 = arith.constant 0 : index
    %c0_19 = arith.constant 0 : index
    %35 = vector.load %arg2[%c0_17, %c5, %c0_18, %c0_19] : memref<1x16x16x128xbf16, #tpu.memory_space<vmem>>, vector<1x1x16x128xbf16>
    %36 = vector.shape_cast %35 : vector<1x1x16x128xbf16> to vector<16x128xbf16>
    %37 = arith.extf %36 : vector<16x128xbf16> to vector<16x128xf32>
    %38 = vector.extract_strided_slice %0 {offsets = [0, 5], sizes = [16, 1], strides = [1, 1]} : vector<16x16xf32> to vector<16x1xf32>
    %39 = vector.broadcast %38 : vector<16x1xf32> to vector<16x128xf32>
    %40 = arith.mulf %37, %39 : vector<16x128xf32>
    %41 = arith.addf %34, %40 : vector<16x128xf32>
    %c0_20 = arith.constant 0 : index
    %c6 = arith.constant 6 : index
    %c0_21 = arith.constant 0 : index
    %c0_22 = arith.constant 0 : index
    %42 = vector.load %arg2[%c0_20, %c6, %c0_21, %c0_22] : memref<1x16x16x128xbf16, #tpu.memory_space<vmem>>, vector<1x1x16x128xbf16>
    %43 = vector.shape_cast %42 : vector<1x1x16x128xbf16> to vector<16x128xbf16>
    %44 = arith.extf %43 : vector<16x128xbf16> to vector<16x128xf32>
    %45 = vector.extract_strided_slice %0 {offsets = [0, 6], sizes = [16, 1], strides = [1, 1]} : vector<16x16xf32> to vector<16x1xf32>
    %46 = vector.broadcast %45 : vector<16x1xf32> to vector<16x128xf32>
    %47 = arith.mulf %44, %46 : vector<16x128xf32>
    %48 = arith.addf %41, %47 : vector<16x128xf32>
    %c0_23 = arith.constant 0 : index
    %c7 = arith.constant 7 : index
    %c0_24 = arith.constant 0 : index
    %c0_25 = arith.constant 0 : index
    %49 = vector.load %arg2[%c0_23, %c7, %c0_24, %c0_25] : memref<1x16x16x128xbf16, #tpu.memory_space<vmem>>, vector<1x1x16x128xbf16>
    %50 = vector.shape_cast %49 : vector<1x1x16x128xbf16> to vector<16x128xbf16>
    %51 = arith.extf %50 : vector<16x128xbf16> to vector<16x128xf32>
    %52 = vector.extract_strided_slice %0 {offsets = [0, 7], sizes = [16, 1], strides = [1, 1]} : vector<16x16xf32> to vector<16x1xf32>
    %53 = vector.broadcast %52 : vector<16x1xf32> to vector<16x128xf32>
    %54 = arith.mulf %51, %53 : vector<16x128xf32>
    %55 = arith.addf %48, %54 : vector<16x128xf32>
    %c0_26 = arith.constant 0 : index
    %c8 = arith.constant 8 : index
    %c0_27 = arith.constant 0 : index
    %c0_28 = arith.constant 0 : index
    %56 = vector.load %arg2[%c0_26, %c8, %c0_27, %c0_28] : memref<1x16x16x128xbf16, #tpu.memory_space<vmem>>, vector<1x1x16x128xbf16>
    %57 = vector.shape_cast %56 : vector<1x1x16x128xbf16> to vector<16x128xbf16>
    %58 = arith.extf %57 : vector<16x128xbf16> to vector<16x128xf32>
    %59 = vector.extract_strided_slice %0 {offsets = [0, 8], sizes = [16, 1], strides = [1, 1]} : vector<16x16xf32> to vector<16x1xf32>
    %60 = vector.broadcast %59 : vector<16x1xf32> to vector<16x128xf32>
    %61 = arith.mulf %58, %60 : vector<16x128xf32>
    %62 = arith.addf %55, %61 : vector<16x128xf32>
    %c0_29 = arith.constant 0 : index
    %c9 = arith.constant 9 : index
    %c0_30 = arith.constant 0 : index
    %c0_31 = arith.constant 0 : index
    %63 = vector.load %arg2[%c0_29, %c9, %c0_30, %c0_31] : memref<1x16x16x128xbf16, #tpu.memory_space<vmem>>, vector<1x1x16x128xbf16>
    %64 = vector.shape_cast %63 : vector<1x1x16x128xbf16> to vector<16x128xbf16>
    %65 = arith.extf %64 : vector<16x128xbf16> to vector<16x128xf32>
    %66 = vector.extract_strided_slice %0 {offsets = [0, 9], sizes = [16, 1], strides = [1, 1]} : vector<16x16xf32> to vector<16x1xf32>
    %67 = vector.broadcast %66 : vector<16x1xf32> to vector<16x128xf32>
    %68 = arith.mulf %65, %67 : vector<16x128xf32>
    %69 = arith.addf %62, %68 : vector<16x128xf32>
    %c0_32 = arith.constant 0 : index
    %c10 = arith.constant 10 : index
    %c0_33 = arith.constant 0 : index
    %c0_34 = arith.constant 0 : index
    %70 = vector.load %arg2[%c0_32, %c10, %c0_33, %c0_34] : memref<1x16x16x128xbf16, #tpu.memory_space<vmem>>, vector<1x1x16x128xbf16>
    %71 = vector.shape_cast %70 : vector<1x1x16x128xbf16> to vector<16x128xbf16>
    %72 = arith.extf %71 : vector<16x128xbf16> to vector<16x128xf32>
    %73 = vector.extract_strided_slice %0 {offsets = [0, 10], sizes = [16, 1], strides = [1, 1]} : vector<16x16xf32> to vector<16x1xf32>
    %74 = vector.broadcast %73 : vector<16x1xf32> to vector<16x128xf32>
    %75 = arith.mulf %72, %74 : vector<16x128xf32>
    %76 = arith.addf %69, %75 : vector<16x128xf32>
    %c0_35 = arith.constant 0 : index
    %c11 = arith.constant 11 : index
    %c0_36 = arith.constant 0 : index
    %c0_37 = arith.constant 0 : index
    %77 = vector.load %arg2[%c0_35, %c11, %c0_36, %c0_37] : memref<1x16x16x128xbf16, #tpu.memory_space<vmem>>, vector<1x1x16x128xbf16>
    %78 = vector.shape_cast %77 : vector<1x1x16x128xbf16> to vector<16x128xbf16>
    %79 = arith.extf %78 : vector<16x128xbf16> to vector<16x128xf32>
    %80 = vector.extract_strided_slice %0 {offsets = [0, 11], sizes = [16, 1], strides = [1, 1]} : vector<16x16xf32> to vector<16x1xf32>
    %81 = vector.broadcast %80 : vector<16x1xf32> to vector<16x128xf32>
    %82 = arith.mulf %79, %81 : vector<16x128xf32>
    %83 = arith.addf %76, %82 : vector<16x128xf32>
    %c0_38 = arith.constant 0 : index
    %c12 = arith.constant 12 : index
    %c0_39 = arith.constant 0 : index
    %c0_40 = arith.constant 0 : index
    %84 = vector.load %arg2[%c0_38, %c12, %c0_39, %c0_40] : memref<1x16x16x128xbf16, #tpu.memory_space<vmem>>, vector<1x1x16x128xbf16>
    %85 = vector.shape_cast %84 : vector<1x1x16x128xbf16> to vector<16x128xbf16>
    %86 = arith.extf %85 : vector<16x128xbf16> to vector<16x128xf32>
    %87 = vector.extract_strided_slice %0 {offsets = [0, 12], sizes = [16, 1], strides = [1, 1]} : vector<16x16xf32> to vector<16x1xf32>
    %88 = vector.broadcast %87 : vector<16x1xf32> to vector<16x128xf32>
    %89 = arith.mulf %86, %88 : vector<16x128xf32>
    %90 = arith.addf %83, %89 : vector<16x128xf32>
    %c0_41 = arith.constant 0 : index
    %c13 = arith.constant 13 : index
    %c0_42 = arith.constant 0 : index
    %c0_43 = arith.constant 0 : index
    %91 = vector.load %arg2[%c0_41, %c13, %c0_42, %c0_43] : memref<1x16x16x128xbf16, #tpu.memory_space<vmem>>, vector<1x1x16x128xbf16>
    %92 = vector.shape_cast %91 : vector<1x1x16x128xbf16> to vector<16x128xbf16>
    %93 = arith.extf %92 : vector<16x128xbf16> to vector<16x128xf32>
    %94 = vector.extract_strided_slice %0 {offsets = [0, 13], sizes = [16, 1], strides = [1, 1]} : vector<16x16xf32> to vector<16x1xf32>
    %95 = vector.broadcast %94 : vector<16x1xf32> to vector<16x128xf32>
    %96 = arith.mulf %93, %95 : vector<16x128xf32>
    %97 = arith.addf %90, %96 : vector<16x128xf32>
    %c0_44 = arith.constant 0 : index
    %c14 = arith.constant 14 : index
    %c0_45 = arith.constant 0 : index
    %c0_46 = arith.constant 0 : index
    %98 = vector.load %arg2[%c0_44, %c14, %c0_45, %c0_46] : memref<1x16x16x128xbf16, #tpu.memory_space<vmem>>, vector<1x1x16x128xbf16>
    %99 = vector.shape_cast %98 : vector<1x1x16x128xbf16> to vector<16x128xbf16>
    %100 = arith.extf %99 : vector<16x128xbf16> to vector<16x128xf32>
    %101 = vector.extract_strided_slice %0 {offsets = [0, 14], sizes = [16, 1], strides = [1, 1]} : vector<16x16xf32> to vector<16x1xf32>
    %102 = vector.broadcast %101 : vector<16x1xf32> to vector<16x128xf32>
    %103 = arith.mulf %100, %102 : vector<16x128xf32>
    %104 = arith.addf %97, %103 : vector<16x128xf32>
    %c0_47 = arith.constant 0 : index
    %c15 = arith.constant 15 : index
    %c0_48 = arith.constant 0 : index
    %c0_49 = arith.constant 0 : index
    %105 = vector.load %arg2[%c0_47, %c15, %c0_48, %c0_49] : memref<1x16x16x128xbf16, #tpu.memory_space<vmem>>, vector<1x1x16x128xbf16>
    %106 = vector.shape_cast %105 : vector<1x1x16x128xbf16> to vector<16x128xbf16>
    %107 = arith.extf %106 : vector<16x128xbf16> to vector<16x128xf32>
    %108 = vector.extract_strided_slice %0 {offsets = [0, 15], sizes = [16, 1], strides = [1, 1]} : vector<16x16xf32> to vector<16x1xf32>
    %109 = vector.broadcast %108 : vector<16x1xf32> to vector<16x128xf32>
    %110 = arith.mulf %107, %109 : vector<16x128xf32>
    %111 = arith.addf %104, %110 : vector<16x128xf32>
    %c0_50 = arith.constant 0 : index
    %c0_51 = arith.constant 0 : index
    %112 = vector.load %arg4[%c0_50, %c0_51] : memref<16x1xf32, #tpu.memory_space<vmem>>, vector<16x1xf32>
    %113 = vector.broadcast %112 : vector<16x1xf32> to vector<16x128xf32>
    %114 = arith.addf %111, %113 : vector<16x128xf32>
    %c128_i32 = arith.constant 128 : i32
    %115 = arith.muli %arg1, %c128_i32 : i32
    %116 = tpu.iota {dimensions = array<i32: 1>} : vector<16x128xi32>
    %117 = vector.broadcast %115 : i32 to vector<16x128xi32>
    %118 = arith.addi %117, %116 : vector<16x128xi32>
    %c16_i32 = arith.constant 16 : i32
    %119 = vector.broadcast %c16_i32 : i32 to vector<16x128xi32>
    %120 = arith.cmpi slt, %118, %119 : vector<16x128xi32>
    %cst = arith.constant 0.000000e+00 : f32
    %121 = vector.broadcast %cst : f32 to vector<16x128xf32>
    %122 = arith.select %120, %114, %121 : vector<16x128xi1>, vector<16x128xf32>
    %123 = arith.truncf %122 : vector<16x128xf32> to vector<16x128xbf16>
    %c0_52 = arith.constant 0 : index
    %c0_53 = arith.constant 0 : index
    %c0_54 = arith.constant 0 : index
    %124 = vector.load %arg7[%c0_52, %c0_53, %c0_54] : memref<1x16x128xbf16, #tpu.memory_space<vmem>>, vector<1x16x128xbf16>
    %125 = vector.shape_cast %124 : vector<1x16x128xbf16> to vector<16x128xbf16>
    %126 = vector.shape_cast %123 : vector<16x128xbf16> to vector<1x16x128xbf16>
    tpu.vector_store %arg7[%c0_52, %c0_53, %c0_54], %126 {strides = array<i32>} : memref<1x16x128xbf16, #tpu.memory_space<vmem>>, vector<1x16x128xbf16>,
    %c0_55 = arith.constant 0 : index
    %c0_56 = arith.constant 0 : index
    %127 = vector.load %arg5[%c0_55, %c0_56] : memref<32x16xbf16, #tpu.memory_space<vmem>>, vector<32x16xbf16>
    %cst_57 = arith.constant dense<0.000000e+00> : vector<32x128xf32>
    %128 = tpu.matmul %127, %123, %cst_57 {dimension_numbers = #tpu.dot_dimension_numbers<[1], [0], [0], [1], [0, 0, 1, 1], [], []>} : vector<32x16xbf16>, vector<16x128xbf16>, vector<32x128xf32> -> vector<32x128xf32>
    %c0_58 = arith.constant 0 : index
    %c0_59 = arith.constant 0 : index
    %129 = vector.load %arg6[%c0_58, %c0_59] : memref<32x1xf32, #tpu.memory_space<vmem>>, vector<32x1xf32>
    %130 = vector.broadcast %129 : vector<32x1xf32> to vector<32x128xf32>
    %131 = arith.addf %128, %130 : vector<32x128xf32>
    %132 = arith.truncf %131 : vector<32x128xf32> to vector<32x128xbf16>
    %133 = vector.extract_strided_slice %132 {offsets = [0, 0], sizes = [16, 128], strides = [1, 1]} : vector<32x128xbf16> to vector<16x128xbf16>
    %c0_60 = arith.constant 0 : index
    %c0_61 = arith.constant 0 : index
    %c0_62 = arith.constant 0 : index
    %134 = vector.load %arg8[%c0_60, %c0_61, %c0_62] : memref<1x16x128xbf16, #tpu.memory_space<vmem>>, vector<1x16x128xbf16>
    %135 = vector.shape_cast %134 : vector<1x16x128xbf16> to vector<16x128xbf16>
    %136 = vector.shape_cast %133 : vector<16x128xbf16> to vector<1x16x128xbf16>
    tpu.vector_store %arg8[%c0_60, %c0_61, %c0_62], %136 {strides = array<i32>} : memref<1x16x128xbf16, #tpu.memory_space<vmem>>, vector<1x16x128xbf16>,
    %137 = vector.extract_strided_slice %132 {offsets = [16, 0], sizes = [16, 128], strides = [1, 1]} : vector<32x128xbf16> to vector<16x128xbf16>
    %c0_63 = arith.constant 0 : index
    %c0_64 = arith.constant 0 : index
    %c0_65 = arith.constant 0 : index
    %138 = vector.load %arg9[%c0_63, %c0_64, %c0_65] : memref<1x16x128xbf16, #tpu.memory_space<vmem>>, vector<1x16x128xbf16>
    %139 = vector.shape_cast %138 : vector<1x16x128xbf16> to vector<16x128xbf16>
    %140 = vector.shape_cast %137 : vector<16x128xbf16> to vector<1x16x128xbf16>
    tpu.vector_store %arg9[%c0_63, %c0_64, %c0_65], %140 {strides = array<i32>} : memref<1x16x128xbf16, #tpu.memory_space<vmem>>, vector<1x16x128xbf16>,
    return
  }
  func.func @transform_0(%arg0: i32, %arg1: i32) -> (i32, i32, i32, i32) {
    %c0_i32 = arith.constant 0 : i32
    %c0_i32_0 = arith.constant 0 : i32
    %c0_i32_1 = arith.constant 0 : i32
    return %arg0, %c0_i32, %c0_i32_0, %arg1 : i32, i32, i32, i32
  }
  func.func @transform_1(%arg0: i32, %arg1: i32) -> (i32, i32) {
    %c0_i32 = arith.constant 0 : i32
    %c0_i32_0 = arith.constant 0 : i32
    %c0_i32_1 = arith.constant 0 : i32
    return %c0_i32, %c0_i32_0 : i32, i32
  }
  func.func @transform_2(%arg0: i32, %arg1: i32) -> (i32, i32) {
    %c0_i32 = arith.constant 0 : i32
    %c0_i32_0 = arith.constant 0 : i32
    %c0_i32_1 = arith.constant 0 : i32
    return %c0_i32, %c0_i32_0 : i32, i32
  }
  func.func @transform_3(%arg0: i32, %arg1: i32) -> (i32, i32) {
    %c0_i32 = arith.constant 0 : i32
    %c0_i32_0 = arith.constant 0 : i32
    %c0_i32_1 = arith.constant 0 : i32
    return %c0_i32, %c0_i32_0 : i32, i32
  }
  func.func @transform_4(%arg0: i32, %arg1: i32) -> (i32, i32) {
    %c0_i32 = arith.constant 0 : i32
    %c0_i32_0 = arith.constant 0 : i32
    %c0_i32_1 = arith.constant 0 : i32
    return %c0_i32, %c0_i32_0 : i32, i32
  }
  func.func @transform_5(%arg0: i32, %arg1: i32) -> (i32, i32, i32) {
    %c0_i32 = arith.constant 0 : i32
    %c0_i32_0 = arith.constant 0 : i32
    return %arg0, %c0_i32, %arg1 : i32, i32, i32
  }
  func.func @transform_6(%arg0: i32, %arg1: i32) -> (i32, i32, i32) {
    %c0_i32 = arith.constant 0 : i32
    %c0_i32_0 = arith.constant 0 : i32
    return %arg0, %c0_i32, %arg1 : i32, i32, i32
  }
  func.func @transform_7(%arg0: i32, %arg1: i32) -> (i32, i32, i32) {
    %c0_i32 = arith.constant 0 : i32
    %c0_i32_0 = arith.constant 0 : i32
    return %arg0, %c0_i32, %arg1 : i32, i32, i32
  }
}

</mosaic_0001>

<bundles_post_ra>
// kernel: tpu_custom_call.1
= control target key start
LH: loop header
LB: loop body
LE: loop exit
PB: predicated region body
PF: predicated region fallthrough
CT: control target
= control target key end

     0   :  { %s1866_s0 = inlined_call_operand.hbm [shape: bf16[2,16,16,128], index: 0, kind: input, shape index: {}]   ;;  %s1867_s1 = inlined_call_operand.vmem [shape: f32[16,16], index: 1, kind: input, shape index: {}]   ;;  %s1868_s2 = inlined_call_operand.vmem [shape: f32[16,1], index: 2, kind: input, shape index: {}]   ;;  %s1869_s3 = inlined_call_operand.vmem [shape: bf16[32,16], index: 3, kind: input, shape index: {}]   ;;  %s1870_s4 = inlined_call_operand.vmem [shape: f32[32,1], index: 4, kind: input, shape index: {}]   ;;  %s1871_s5 = inlined_call_operand.hbm [shape: bf16[2,16,128], index: 5, kind: output, shape index: {0}]   ;;  %s1872_s6 = inlined_call_operand.hbm [shape: bf16[2,16,128], index: 6, kind: output, shape index: {1}]   ;;  %s1873_s7 = inlined_call_operand.hbm [shape: bf16[2,16,128], index: 7, kind: output, shape index: {2}]  }
   0x1   :  { %1880 = sst [smem:[#allocation12_spill]] %s1866_s0 }
   0x2   :  { %13 = vsyncpa [#allocation3], 0 }
   0x3   :  { %15 = vsyncpa [#allocation3 + $0x1], 0 }
   0x4   :  { %16 = vsyncpa [#allocation4], 0 }
   0x5   :  { %18 = vsyncpa [#allocation4 + $0x1], 0 }
   0x6   :  { %19 = vsyncpa [#allocation7], 0 }
   0x7   :  { %21 = vsyncpa [#allocation7 + $0x1], 0  ;;  %s1504_s24 = smov 0   ;;  %s1506_s25 = smov 0  }
   0x8   :  { %s1508_s26 = smov 0   ;;  %s1510_s27 = smov 0  }
   0x9   :  { %s1512_s28 = smov 0   ;;  %s1514_s29 = smov 0  }
   0xa LB: > { %s1535_s30 = sadd.s32 4294967295, %s1438_s29   ;;  %s1874_s8 = sadd.s32 4294967294, %s1438_s29   ;;  %s1438_s29 = sphi %s1514_s29, %s27_s29   ;;  %s1434_s28 = sphi %s1512_s28, %s1899_s28   ;;  %s1430_s27 = sphi %s1510_s27, %s1898_s27   ;;  %s1426_s26 = sphi %s1508_s26, %s1897_s26   ;;  %s1422_s25 = sphi %s1506_s25, %s1896_s25   ;;  %s1418_s24 = sphi %s1504_s24, %s1895_s24  }
   0xb   : > { %s39_s9 = sadd.s32 1, %s1434_s28  ;;  %s48_s10 = sadd.s32 1, %s1426_s26 }
   0xc   : > { %p41_p0 = scmp.ge.s32.totalorder %s39_s9, 2  ;;  %p55_p1 = scmp.ne.s32.totalorder %s1426_s26, %s1422_s25 }
   0xd   : > { %p56_p2 = scmp.eq.s32.totalorder %s1438_s29, 0  ;;  %p61_p3 = scmp.ne.s32.totalorder %s1422_s25, %s1418_s24 }
   0xe   : > { %s1901_s9 = smov (%p41_p0, %s39_s9), 0  ;;  %p62_p5 = scmp.eq.s32.totalorder %s1535_s30, 0 }
   0xf   : > { %p1547_p4 = por %p56_p2, %p55_p1  ;;  %s43_s12 = ssub.s32 %s1434_s28, %s1901_s9 }
  0x10   : > { %p171_p6 = scmp.eq.s32.totalorder %s1535_s30, 1  ;;  %p46_p7 = scmp.eq.s32.totalorder %s43_s12, 0 }
  0x11   : > { %p1555_p8 = por %p62_p5, %p61_p3  ;;  %p177_p10 = scmp.eq.s32.totalorder %s1874_s8, 1 }
  0x12   : > { %p1559_p9 = por %p171_p6, %p55_p1  ;;  %p1166_p13 = scmp.lt.s32.totalorder %s1438_s29, 2 }
  0x13   : > { %s1566_s15 = scalar_select %p46_p7, %s1426_s26, %s48_s10  }
  0x14   : > { %s1883_s14 = scalar_select %p1559_p9, 1, 0 }
  0x15   : > { %p1568_p11 = por %p177_p10, %p61_p3  ;;  %s265_s17 = sand.u32 1, %s1426_s26  }
  0x16   : > { %s969_s18 = sshll.u32 %s265_s17, 7  ;;  %s1031_s19 = sshll.u32 %s1434_s28, 11 }
  0x17   : > { %s1884_s16 = scalar_select %p1568_p11, 1, 0 }
  0x18   : > { %s1885_s0 = sld [smem:[#allocation12_spill]]  ;;  %s269_s23 = scalar_lea.vmem [#allocation2], %s969_s18 }
  0x19   : > { %s277_s10 = sshll.u32 %s269_s23, 4  ;;  %p1585_p0 = pnand %p1166_p13, %p1547_p4  ;;  %s1581_s10 = int_to_ptr.vmem [resolvable:$true] %s277_s10 }
  0x1a   : > { %s1590_s8 = scalar_lea.sflag [#allocation3], %s265_s17 }
  0x1b   : > { %p1268_p3 = pneg %p1585_p0 }
  0x1e   : > { %s1579_s22 = scalar_lea.hbm %s1885_s0, %s1031_s19  ;;  %s1271_s11 = scalar_lea.hbm %s1885_s0, 4096 }
  0x1f   : > { %s1266_s19 = scalar_lea.hbm %s1579_s22, 2048  ;;  %p1272_p4 = scmp.lt.u32.totalorder %s1579_s22, %s1885_s0 }
  0x20   : > { %p1267_p2 = scmp.ne.s32.totalorder %s1579_s22, %s1266_s19  ;;  %p1273_p7 = scmp.lt.u32.totalorder %s1271_s11, %s1266_s19 }
  0x21   : > { %p1275_p13 = scmp.lt.u32.totalorder %s1266_s19, %s1579_s22 }
  0x22   : > { %p1269_p5 = pnand %p1268_p3, %p1267_p2  ;;  %p1274_p10 = por %p1273_p7, %p1272_p4 }
  0x24   : > { %p1270_p6 = pneg %p1269_p5  ;;  %p1276_p12 = por %p1275_p13, %p1274_p10 }
  0x26   : > { %p1277_p1 = pnand %p1276_p12, %p1270_p6 }
  0x28   : > { %1280 = shalt.err (!%p1277_p1)
}
  0x29   : > { %s1281_s17 = scalar_lea.vmem %s1581_s10, 2048  ;;  %s1440_s18 = smov [#allocation2]  }
  0x2a   : > { %p1282_p2 = scmp.ne.s32.totalorder %s1581_s10, %s1281_s17  ;;  %s1286_s20 = sshll.u32 %s1440_s18, 4  ;;  %s1287_s20 = int_to_ptr.vmem [resolvable:$false] %s1286_s20 }
  0x2b   : > { %s1288_s21 = scalar_lea.vmem %s1287_s20, 4096  ;;  %p1289_p9 = scmp.lt.s32.totalorder %s1581_s10, %s1287_s20 }
  0x2c   : > { %p1284_p5 = pnand %p1282_p2, %p1268_p3  ;;  %p1290_p4 = scmp.lt.s32.totalorder %s1288_s21, %s1281_s17 }
  0x2e   : > { %p1285_p11 = pneg %p1284_p5  ;;  %p1291_p7 = por %p1290_p4, %p1289_p9 }
  0x30   : > { %p1292_p10 = pnand %p1291_p7, %p1285_p11 }
  0x32   : > { %1295 = shalt.err (!%p1292_p10)
}
  0x33   : > { %s1441_s19 = smov 64   ;;  %s1442_s11 = smov 4  }
  0x34   : > { %1155 = dma.hbm_to_vmem [thread:$0]  (!%p1585_p0), %s1579_s22, 2048, %s1581_s10, %s1590_s8, %s1441_s19, %s1441_s19, %s1442_s11  }
  0x35   : > { %p285_p12 = scmp.lt.s32.totalorder %s1438_s29, 3  ;;  %p1887_p1 = scmp.ge.s32.totalorder %s1438_s29, 1 }
  0x37   : > { %p286_p3 = pnand %p1887_p1, %p285_p12 }
  0x38   : > { %s1622_s23 = sand.u32 (!%p286_p3), 1, %s1422_s25  }
  0x39   : > { %289 = sbr.rel (%p286_p3) target bundleno = 558 (0x22e), region = 40  ;;  %s973_s17 = sshll.u32 (!%p286_p3), %s1622_s23, 7 }
  0x3a   : > { %s292_s18 = scalar_lea.sflag (!%p286_p3), [#allocation3], %s1622_s23  ;;  %s1626_s20 = scalar_lea.vmem (!%p286_p3), [#allocation2], %s973_s17 }
  0x40   : > { %1405 = dma.done.wait (%p1555_p8), %s292_s18, 2048  }
  0x41   : > { %1407 = vsyncadd (%p1555_p8), %s292_s18, 4294965248  ;;  %v1443_v0 = vmov 1   ;;  %v1444_v1 = vmov 0   ;;  %v1636_v2 = vld [vmem:[%s1867_s1] sm:$0xff]  ;;  %v1643_v3 = vld [vmem:[%s1867_s1 + $0x8] sm:$0xff]  ;;  %v1445_v4 = vmov 2  }
  0x42   : > { %1237 = vset.pattern.permute.xlu1 %v1443_v0  ;;  %1236 = vset.pattern.permute.xlu0 %v1444_v1  ;;  %v1446_v5 = vmov 3   ;;  %v1447_v6 = vmov 4   ;;  %v1448_v7 = vmov 5   ;;  %v1449_v8 = vmov 6   ;;  %v610_v18 = vld [vmem:[%s1868_s2] sm:$0xff]  ;;  %v611_v19 = vld [vmem:[%s1868_s2 + $0x8] sm:$0xff] }
  0x43   : > { %361 = vperm.xlu1 %1237, %v1636_v2   ;;  %345 = vperm.xlu0 %1236, %v1636_v2   ;;  %v1450_v9 = vmov 8   ;;  %v1451_v10 = vmov 9   ;;  %v1452_v11 = vmov 7   ;;  %v1453_v12 = vmov 11   ;;  %v647_v20 = vld [vmem:[%s1870_s4 + $0x8] sm:$0xff]  ;;  %v648_v21 = vld [vmem:[%s1870_s4 + $0x10] sm:$0xff] }
  0x44   : > { %v1454_v13 = vmov 12   ;;  %v1455_v14 = vmov 14   ;;  %v1456_v15 = vmov 15   ;;  %v1457_v16 = vmov 10   ;;  %v1264_v22 = vld [vmem:[%s1869_s3] sm:$0xff]   ;;  %v649_v24 = vld [vmem:[%s1870_s4 + $0x18] sm:$0xff] }
  0x45   : > { %v1458_v17 = vmov 13   ;;  %vm680_vm0 = vcmask 130048   ;;  %v646_v23 = vld [vmem:[%s1870_s4] sm:$0xff]  ;;  %v1120_v37 = vld [vmem:[%s1626_s20 + $0x8] sm:$0xff]   ;;  %v1121_v40 = vld [vmem:[%s1626_s20 + $0x10] sm:$0xff]   ;;  %s1733_s10 = sshll.u32 %s1430_s27, 7 }
  0x46   : > { %1140 = vmatprep.mubr.msk.bf16.mxu0 %vm680_vm0, %v1264_v22  ;;  %v1042_v38 = vld [vmem:[%s1626_s20] sm:$0xff]   ;;  %v1047_v41 = vunpack.c.l.bf16 %v1120_v37  ;;  %v1122_v44 = vld [vmem:[%s1626_s20 + $0x18] sm:$0xff]   ;;  %v1051_v45 = vunpack.c.l.bf16 %v1121_v40  ;;  %v1048_v47 = vunpack.c.h.bf16 %v1120_v37  ;;  %v1052_v53 = vunpack.c.h.bf16 %v1121_v40  ;;  %v1124_v56 = vld [vmem:[%s1626_s20 + $0x28] sm:$0xff]   ;;  %s1741_s21 = scalar_lea.hbm %s1871_s5, %s1733_s10  ;;  %p1888_p9 = scmp.ne.s32.totalorder %s1883_s14, 0 }
  0x47   : > { %365 = vperm.xlu1 %1237, %v1643_v3   ;;  %350 = vperm.xlu0 %1236, %v1643_v3   ;;  %v1043_v42 = vunpack.c.l.bf16 %v1042_v38  ;;  %v1123_v48 = vld [vmem:[%s1626_s20 + $0x20] sm:$0xff]   ;;  %v1044_v51 = vunpack.c.h.bf16 %v1042_v38  ;;  %v1055_v52 = vunpack.c.l.bf16 %v1122_v44  ;;  %v1056_v57 = vunpack.c.h.bf16 %v1122_v44  ;;  %v1128_v38 = vld [vmem:[%s1626_s20 + $0x48] sm:$0xff]   ;;  %v1129_v40 = vld [vmem:[%s1626_s20 + $0x50] sm:$0xff]   ;;  %s1459_s17 = smov [#allocation5]  }
  0x48   : > { %v1059_v55 = vunpack.c.l.bf16 %v1123_v48  ;;  %v1063_v0 = vunpack.c.l.bf16 %v1124_v56  ;;  %s1300_s27 = sshll.u32 %s1459_s17, 4  ;;  %s1301_s27 = int_to_ptr.vmem [resolvable:$false] %s1300_s27 }
  0x49   : > { %s1302_s18 = scalar_lea.vmem %s1301_s27, 256 }
  0x4b   : > { %1239 = vset.pattern.permute.xlu1 %v1445_v4  ;;  %1238 = vset.pattern.permute.xlu0 %v1445_v4  ;;  %v1060_v4 = vunpack.c.h.bf16 %v1123_v48  ;;  %v1130_v48 = vld [vmem:[%s1626_s20 + $0x58] sm:$0xff]  }
  0x4c   : > { %382 = vperm.xlu1 %1239, %v1643_v3   ;;  %378 = vperm.xlu0 %1238, %v1636_v2  }
  0x50   : > { %1240 = vset.pattern.permute.xlu1 %v1446_v5  ;;  %1241 = vset.pattern.permute.xlu0 %v1446_v5  ;;  %v1126_v5 = vld [vmem:[%s1626_s20 + $0x38] sm:$0xff]  }
  0x51   : > { %395 = vperm.xlu1 %1240, %v1636_v2   ;;  %399 = vperm.xlu0 %1241, %v1643_v3  }
  0x55   : > { %1242 = vset.pattern.permute.xlu1 %v1447_v6  ;;  %1243 = vset.pattern.permute.xlu0 %v1448_v7 }
  0x56   : > { %412 = vperm.xlu1 %1242, %v1636_v2   ;;  %429 = vperm.xlu0 %1243, %v1636_v2  }
  0x5a   : > { %416 = vperm.xlu1 %1242, %v1643_v3   ;;  %1246 = vset.pattern.permute.xlu0 %v1449_v8 }
  0x5b   : > { %450 = vperm.xlu0 %1246, %v1643_v3  }
  0x5e   : > { %1244 = vset.pattern.permute.xlu1 %v1448_v7  ;;  %v1064_v7 = vunpack.c.h.bf16 %v1124_v56 }
  0x5f   : > { %433 = vperm.xlu1 %1244, %v1643_v3   ;;  %1248 = vset.pattern.permute.xlu0 %v1450_v9 }
  0x60   : > { %480 = vperm.xlu0 %1248, %v1636_v2  }
  0x63   : > { %1245 = vset.pattern.permute.xlu1 %v1449_v8  ;;  %v1125_v8 = vld [vmem:[%s1626_s20 + $0x30] sm:$0xff]  }
  0x64   : > { %446 = vperm.xlu1 %1245, %v1636_v2   ;;  %1251 = vset.pattern.permute.xlu0 %v1451_v10 }
  0x65   : > { %501 = vperm.xlu0 %1251, %v1643_v3  }
  0x68   : > { %1247 = vset.pattern.permute.xlu1 %v1452_v11 }
  0x69   : > { %463 = vperm.xlu1 %1247, %v1636_v2   ;;  %1253 = vset.pattern.permute.xlu0 %v1453_v12 }
  0x6a   : > { %531 = vperm.xlu0 %1253, %v1636_v2  }
  0x6d   : > { %467 = vperm.xlu1 %1247, %v1643_v3  }
  0x6e   : > { %1256 = vset.pattern.permute.xlu0 %v1454_v13 }
  0x6f   : > { %552 = vperm.xlu0 %1256, %v1643_v3  }
  0x71   : > { %1249 = vset.pattern.permute.xlu1 %v1450_v9 }
  0x72   : > { %484 = vperm.xlu1 %1249, %v1643_v3  }
  0x73   : > { %1258 = vset.pattern.permute.xlu0 %v1455_v14 }
  0x74   : > { %582 = vperm.xlu0 %1258, %v1636_v2  }
  0x76   : > { %1250 = vset.pattern.permute.xlu1 %v1451_v10 }
  0x77   : > { %497 = vperm.xlu1 %1250, %v1636_v2  }
  0x78   : > { %1261 = vset.pattern.permute.xlu0 %v1456_v15 }
  0x79   : > { %603 = vperm.xlu0 %1261, %v1643_v3  }
  0x7b   : > { %1252 = vset.pattern.permute.xlu1 %v1457_v16 }
  0x7c   : > { %514 = vperm.xlu1 %1252, %v1636_v2  }
  0x7d   : > { %1263 = vset.pattern.permute.xlu0 %v1444_v1 }
  0x7e   : > { %652 = vperm.xlu0 %1263, %v646_v23   ;;  %v1068_v23 = vunpack.c.h.bf16 %v1125_v8 }
  0x80   : > { %518 = vperm.xlu1 %1252, %v1643_v3  }
  0x82   : > { %667 = vperm.xlu0 %1263, %v649_v24  }
  0x84   : > { %1254 = vset.pattern.permute.xlu1 %v1453_v12 }
  0x85   : > { %535 = vperm.xlu1 %1254, %v1643_v3  }
  0x89   : > { %1255 = vset.pattern.permute.xlu1 %v1454_v13  ;;  %v1067_v13 = vunpack.c.l.bf16 %v1125_v8 }
  0x8a   : > { %548 = vperm.xlu1 %1255, %v1636_v2  }
  0x8e   : > { %1257 = vset.pattern.permute.xlu1 %v1458_v17 }
  0x8f   : > { %565 = vperm.xlu1 %1257, %v1636_v2  }
  0x93   : > { %569 = vperm.xlu1 %1257, %v1643_v3  }
  0x97   : > { %1259 = vset.pattern.permute.xlu1 %v1455_v14  ;;  %v1071_v14 = vunpack.c.l.bf16 %v1126_v5 }
  0x98   : > { %586 = vperm.xlu1 %1259, %v1643_v3  }
  0x9c   : > { %1260 = vset.pattern.permute.xlu1 %v1456_v15 }
  0x9d   : > { %599 = vperm.xlu1 %1260, %v1636_v2  }
  0xa1   : > { %1262 = vset.pattern.permute.xlu1 %v1444_v1 }
  0xa2   : > { %614 = vperm.xlu1 %1262, %v610_v18  }
  0xa6   : > { %619 = vperm.xlu1 %1262, %v611_v19   ;;  %v1127_v19 = vld [vmem:[%s1626_s20 + $0x40] sm:$0xff]  }
  0xa7   : > { %v1076_v37 = vunpack.c.h.bf16 %v1127_v19 }
  0xaa   : > { %657 = vperm.xlu1 %1262, %v647_v20  }
  0xae   : > { %662 = vperm.xlu1 %1262, %v648_v21  }
  0xc2   : > { %v362_v25 = vpop.permute.xlu1 %361  ;;  %v346_v34 = vpop.permute.xlu0 %345 }
  0xc3   : > { %v368_v49 = vmul.f32 %v1047_v41, %v362_v25  ;;  %v353_v50 = vmul.f32 %v1043_v42, %v346_v34  ;;  %v1072_v34 = vunpack.c.h.bf16 %v1126_v5 }
  0xc5   : > { %v370_v60 = vadd.f32 %v368_v49, %v353_v50 }
  0xc6   : > { %v366_v26 = vpop.permute.xlu1 %365  ;;  %v351_v36 = vpop.permute.xlu0 %350 }
  0xc7   : > { %v369_v61 = vmul.f32 %v1048_v47, %v366_v26  ;;  %v354_v62 = vmul.f32 %v1044_v51, %v351_v36  ;;  %v1075_v26 = vunpack.c.l.bf16 %v1127_v19  ;;  %v1083_v47 = vunpack.c.l.bf16 %v1129_v40 }
  0xc8   : > { %v1080_v51 = vunpack.c.h.bf16 %v1128_v38 }
  0xc9   : > { %v371_v10 = vadd.f32 %v369_v61, %v354_v62  ;;  %v1131_v61 = vld [vmem:[%s1626_s20 + $0x60] sm:$0xff]   ;;  %v1132_v62 = vld [vmem:[%s1626_s20 + $0x68] sm:$0xff]  }
  0xca   : > { %v1095_v5 = vunpack.c.l.bf16 %v1132_v62 }
  0xcb   : > { %v383_v27 = vpop.permute.xlu1 %382  ;;  %v379_v43 = vpop.permute.xlu0 %378 }
  0xcc   : > { %v385_v54 = vmul.f32 %v1051_v45, %v379_v43  ;;  %v386_v1 = vmul.f32 %v1052_v53, %v383_v27  ;;  %v1079_v43 = vunpack.c.l.bf16 %v1128_v38  ;;  %v1087_v53 = vunpack.c.l.bf16 %v1130_v48 }
  0xcd   : > { %v625_v38 = vlaneseq }
  0xce   : > { %v387_v2 = vadd.f32 %v385_v54, %v370_v60  ;;  %v388_v15 = vadd.f32 %v386_v1, %v371_v10  ;;  %v1092_v10 = vunpack.c.h.bf16 %v1131_v61 }
  0xd0   : > { %v396_v28 = vpop.permute.xlu1 %395  ;;  %v400_v58 = vpop.permute.xlu0 %399 }
  0xd1   : > { %v402_v63 = vmul.f32 %v1055_v52, %v396_v28  ;;  %v403_v12 = vmul.f32 %v1056_v57, %v400_v58  ;;  %v1084_v57 = vunpack.c.h.bf16 %v1129_v40 }
  0xd3   : > { %v404_v11 = vadd.f32 %v402_v63, %v387_v2  ;;  %v405_v21 = vadd.f32 %v403_v12, %v388_v15  ;;  %v1091_v2 = vunpack.c.l.bf16 %v1131_v61 }
  0xd5   : > { %v413_v29 = vpop.permute.xlu1 %412  ;;  %v430_v6 = vpop.permute.xlu0 %429 }
  0xd6   : > { %v419_v3 = vmul.f32 %v1059_v55, %v413_v29  ;;  %v436_v17 = vmul.f32 %v1063_v0, %v430_v6 }
  0xd8   : > { %v421_v16 = vadd.f32 %v419_v3, %v404_v11 }
  0xd9   : > { %v417_v30 = vpop.permute.xlu1 %416 }
  0xda   : > { %v420_v18 = vmul.f32 %v1060_v4, %v417_v30  ;;  %v451_v20 = vpop.permute.xlu0 %450  ;;  %v438_v27 = vadd.f32 %v436_v17, %v421_v16  ;;  %v1096_v16 = vunpack.c.h.bf16 %v1132_v62 }
  0xdb   : > { %v454_v30 = vmul.f32 %v1068_v23, %v451_v20 }
  0xdc   : > { %v422_v28 = vadd.f32 %v420_v18, %v405_v21 }
  0xde   : > { %v434_v31 = vpop.permute.xlu1 %433 }
  0xdf   : > { %v437_v22 = vmul.f32 %v1064_v7, %v434_v31  ;;  %v481_v36 = vpop.permute.xlu0 %480 }
  0xe0   : > { %v487_v31 = vmul.f32 %v1075_v26, %v481_v36 }
  0xe1   : > { %v439_v41 = vadd.f32 %v437_v22, %v422_v28  ;;  %v1134_v22 = vld [vmem:[%s1626_s20 + $0x78] sm:$0xff]  }
  0xe2   : > { %v1103_v23 = vunpack.c.l.bf16 %v1134_v22 }
  0xe3   : > { %v447_v32 = vpop.permute.xlu1 %446 }
  0xe4   : > { %v453_v24 = vmul.f32 %v1067_v13, %v447_v32  ;;  %v502_v49 = vpop.permute.xlu0 %501 }
  0xe5   : > { %v505_v0 = vmul.f32 %v1080_v51, %v502_v49 }
  0xe6   : > { %v455_v42 = vadd.f32 %v453_v24, %v438_v27 }
  0xe8   : > { %v464_v33 = vpop.permute.xlu1 %463 }
  0xe9   : > { %v470_v29 = vmul.f32 %v1071_v14, %v464_v33  ;;  %v456_v33 = vadd.f32 %v454_v30, %v439_v41  ;;  %v532_v60 = vpop.permute.xlu0 %531 }
  0xeb   : > { %v472_v45 = vadd.f32 %v470_v29, %v455_v42  ;;  %v1104_v29 = vunpack.c.h.bf16 %v1134_v22 }
  0xec   : > { %v1699_v35 = vpop.permute.xlu1 %467 }
  0xed   : > { %v471_v32 = vmul.f32 %v1072_v34, %v1699_v35  ;;  %v489_v54 = vadd.f32 %v487_v31, %v472_v45  ;;  %v1088_v35 = vunpack.c.h.bf16 %v1130_v48 }
  0xee   : > { %v553_v7 = vpop.permute.xlu0 %552 }
  0xef   : > { %v473_v55 = vadd.f32 %v471_v32, %v456_v33  ;;  %v556_v20 = vmul.f32 %v1092_v10, %v553_v7 }
  0xf1   : > { %v1703_v39 = vpop.permute.xlu1 %484 }
  0xf2   : > { %v488_v50 = vmul.f32 %v1076_v37, %v1703_v39  ;;  %v538_v39 = vmul.f32 %v1087_v53, %v532_v60 }
  0xf3   : > { %v583_v17 = vpop.permute.xlu0 %582 }
  0xf4   : > { %v490_v63 = vadd.f32 %v488_v50, %v473_v55 }
  0xf6   : > { %v1707_v46 = vpop.permute.xlu1 %497  ;;  %v507_v8 = vadd.f32 %v505_v0, %v490_v63 }
  0xf7   : > { %v504_v52 = vmul.f32 %v1079_v43, %v1707_v46  ;;  %v1133_v46 = vld [vmem:[%s1626_s20 + $0x70] sm:$0xff]   ;;  %s1725_s20 = sshll.u32 %s1622_s23, 3 }
  0xf8   : > { %v1099_v12 = vunpack.c.l.bf16 %v1133_v46  ;;  %v604_v36 = vpop.permute.xlu0 %603  ;;  %s321_s8 = scalar_lea.vmem [#allocation5], %s1725_s20 }
  0xf9   : > { %v506_v1 = vadd.f32 %v504_v52, %v489_v54  ;;  %v607_v42 = vmul.f32 %v1104_v29, %v604_v36  ;;  %v1265_v52 = vld [vmem:[%s1869_s3 + $0x8] sm:$0xff]   ;;  %s781_s22 = sshll.u32 %s321_s8, 4  ;;  %s1735_s22 = int_to_ptr.vmem [resolvable:$true] %s781_s22 }
  0xfa   : > { %v589_v26 = vmul.f32 %v1099_v12, %v583_v17  ;;  %s1296_s11 = scalar_lea.vmem %s1735_s22, 128  ;;  %p1303_p6 = scmp.lt.s32.totalorder %s1735_s22, %s1301_s27 }
  0xfb   : > { %v515_v59 = vpop.permute.xlu1 %514  ;;  %p1297_p8 = scmp.ne.s32.totalorder %s1735_s22, %s1296_s11  ;;  %p1304_p13 = scmp.lt.s32.totalorder %s1302_s18, %s1296_s11 }
  0xfc   : > { %v521_v56 = vmul.f32 %v1083_v47, %v515_v59 }
  0xfd   : > { %p1298_p11 = pnand %p1297_p8, %p1888_p9  ;;  %p1305_p2 = por %p1304_p13, %p1303_p6 }
  0xfe   : > { %v523_v3 = vadd.f32 %v521_v56, %v506_v1 }
  0xff   : > { %v519_v9 = vpop.permute.xlu1 %518  ;;  %p1299_p0 = pneg %p1298_p11 }
 0x100   : > { %v522_v4 = vmul.f32 %v1084_v57, %v519_v9  ;;  %v540_v13 = vadd.f32 %v538_v39, %v523_v3  ;;  %v1100_v9 = vunpack.c.h.bf16 %v1133_v46 }
 0x101   : > { %p1306_p5 = pnand %p1305_p2, %p1299_p0 }
 0x102   : > { %v524_v14 = vadd.f32 %v522_v4, %v507_v8 }
 0x104   : > { %v536_v25 = vpop.permute.xlu1 %535 }
 0x105   : > { %v539_v59 = vmul.f32 %v1088_v35, %v536_v25 }
 0x107   : > { %v541_v19 = vadd.f32 %v539_v59, %v524_v14 }
 0x109   : > { %v549_v44 = vpop.permute.xlu1 %548  ;;  %v558_v28 = vadd.f32 %v556_v20, %v541_v19 }
 0x10a   : > { %v555_v11 = vmul.f32 %v1091_v2, %v549_v44  ;;  %v626_v44 = vand.u32 127, %v625_v38 }
 0x10c   : > { %v557_v21 = vadd.f32 %v555_v11, %v540_v13  ;;  %vm629_vm1 = vcmp.lt.s32.totalorder %v626_v44, 16 }
 0x10d   : > { %vm1011_vm2 = vmpackc.low %vm629_vm1, %vm629_vm1 }
 0x10e   : > { %v566_v58 = vpop.permute.xlu1 %565 }
 0x10f   : > { %v572_v15 = vmul.f32 %v1095_v5, %v566_v58 }
 0x111   : > { %v574_v24 = vadd.f32 %v572_v15, %v557_v21 }
 0x112   : > { %v570_v6 = vpop.permute.xlu1 %569 }
 0x113   : > { %v573_v27 = vmul.f32 %v1096_v16, %v570_v6  ;;  %v591_v40 = vadd.f32 %v589_v26, %v574_v24 }
 0x115   : > { %v575_v41 = vadd.f32 %v573_v27, %v558_v28 }
 0x117   : > { %v587_v18 = vpop.permute.xlu1 %586 }
 0x118   : > { %v590_v25 = vmul.f32 %v1100_v9, %v587_v18 }
 0x11a   : > { %v592_v30 = vadd.f32 %v590_v25, %v575_v41 }
 0x11c   : > { %v600_v34 = vpop.permute.xlu1 %599  ;;  %v609_v32 = vadd.f32 %v607_v42, %v592_v30 }
 0x11d   : > { %v606_v37 = vmul.f32 %v1103_v23, %v600_v34 }
 0x11f   : > { %v608_v43 = vadd.f32 %v606_v37, %v591_v40 }
 0x121   : > { %v615_v45 = vpop.permute.xlu1 %614 }
 0x122   : > { %v622_v31 = vadd.f32 %v615_v45, %v608_v43 }
 0x124   : > { %v630_v49 = vsel %vm629_vm1, %v622_v31, 0.0 }
 0x125   : > { %v620_v47 = vpop.permute.xlu1 %619 }
 0x126   : > { %v623_v48 = vadd.f32 %v620_v47, %v609_v32 }
 0x128   : > { %v631_v33 = vsel %vm629_vm1, %v623_v48, 0.0  ;;  %v1012_v50 = vpack.c.bf16 %v623_v48, %v622_v31 }
 0x129   : > { %v1108_v51 = vpack.c.bf16 %v631_v33, %v630_v49 }
 0x12a   : > { %1138 = vmatprep.subr.msk.bf16.mxu0 %vm1011_vm2, %v1012_v50 }
 0x12b   : > { %1109 = vst [vmem:[%s321_s8] sm:$0xff] %v1108_v51   ;;  %1139 = vmatpush3.bf16.msk.msra.mxu0 %vm1011_vm2, %v1012_v50 }
 0x12e   : > { %1141 = vmatmul.mubr.msk.bf16.vlgmr.msra.gmra.mrb[0].mxu0 %vm680_vm0, %v1265_v52 }
 0x12f   : > { %1309 = shalt.err (!%p1306_p5)
}
 0x130   : > { %s1310_s8 = scalar_lea.hbm %s1741_s21, 128  ;;  %s1314_s17 = scalar_lea.hbm %s1871_s5, 256 }
 0x131   : > { %p1311_p4 = scmp.ne.s32.totalorder %s1741_s21, %s1310_s8  ;;  %p1315_p12 = scmp.lt.u32.totalorder %s1741_s21, %s1871_s5 }
 0x132   : > { %p1316_p1 = scmp.lt.u32.totalorder %s1314_s17, %s1310_s8  ;;  %p1318_p8 = scmp.lt.u32.totalorder %s1310_s8, %s1741_s21 }
 0x133   : > { %p1312_p7 = pnand %p1311_p4, %p1888_p9 }
 0x134   : > { %p1317_p3 = por %p1316_p1, %p1315_p12 }
 0x135   : > { %p1313_p10 = pneg %p1312_p7 }
 0x136   : > { %p1319_p11 = por %p1318_p8, %p1317_p3 }
 0x138   : > { %p1320_p0 = pnand %p1319_p11, %p1313_p10 }
 0x13a   : > { %1323 = shalt.err (!%p1320_p0)
}
 0x13b   : > { %s1876_s11 = smov 64   ;;  %s1878_s18 = smov 4   ;;  %v658_v53 = vpop.permute.xlu1 %657  ;;  %v653_v54 = vpop.permute.xlu0 %652 }
 0x13c   : > { %s1889_s19 = scalar_lea.sflag [#allocation4], %s1622_s23  ;;  %s328_s8 = scalar_lea.vmem [#allocation6], %s1725_s20 }
 0x13d   : > { %1146 = dma.vmem_to_hbm [thread:$0]  (%p1888_p9), %s1735_s22, 128, %s1741_s21, %s1889_s19, %s1876_s11, %s1876_s11, %s1878_s18  }
 0x13e   : > { %s798_s12 = sshll.u32 %s328_s8, 4  ;;  %s761_s13 = sand.u32 1, %s1535_s30   ;;  %s1773_s12 = int_to_ptr.vmem [resolvable:$true] %s798_s12 }
 0x13f   : > { %v663_v56 = vpop.permute.xlu1 %662  ;;  %v668_v58 = vpop.permute.xlu0 %667  ;;  %s335_s23 = scalar_lea.vmem [#allocation8], %s1725_s20  ;;  %s1779_s27 = scalar_lea.hbm %s1872_s6, %s1733_s10 }
 0x140   : > { %s815_s17 = sshll.u32 %s335_s23, 4  ;;  %s1787_s20 = scalar_lea.hbm %s1873_s7, %s1733_s10  ;;  %s1781_s17 = int_to_ptr.vmem [resolvable:$true] %s815_s17 }
 0x141   : > { %s1789_s11 = scalar_lea.sflag [#allocation7], %s761_s13  ;;  %s1324_s18 = scalar_lea.vmem %s1773_s12, 128 }
 0x142   : > { %p1325_p6 = scmp.ne.s32.totalorder %s1773_s12, %s1324_s18  ;;  %s1462_s0 = smov [#allocation6]  }
 0x143   : > { %s1328_s22 = sshll.u32 %s1462_s0, 4  ;;  %s1329_s22 = int_to_ptr.vmem [resolvable:$false] %s1328_s22 }
 0x144   : > { %p1326_p13 = pnand %p1325_p6, %p1888_p9  ;;  %s1330_s21 = scalar_lea.vmem %s1329_s22, 256 }
 0x145   : > { %p1331_p5 = scmp.lt.s32.totalorder %s1773_s12, %s1329_s22  ;;  %p1332_p4 = scmp.lt.s32.totalorder %s1330_s21, %s1324_s18 }
 0x146   : > { %p1327_p2 = pneg %p1326_p13 }
 0x147   : > { %p1333_p7 = por %p1332_p4, %p1331_p5 }
 0x149   : > { %p1334_p10 = pnand %p1333_p7, %p1327_p2 }
 0x201   : > { %v1142_v55 = vpop.f32.mrb[0].mxu0 }
 0x202   : > { %v721_v57 = vpop.f32.mrb[1].mxu0  ;;  %v730_v35 = vadd.f32 %v1142_v55, %v663_v56 }
 0x203   : > { %v1143_v60 = vpop.f32.mrb[2].mxu0  ;;  %v722_v63 = vadd.f32 %v721_v57, %v653_v54 }
 0x204   : > { %v733_v61 = vadd.f32 %v1143_v60, %v668_v58  ;;  %v724_v62 = vpop.f32.mrb[3].mxu0 }
 0x205   : > { %v725_v0 = vadd.f32 %v724_v62, %v658_v53 }
 0x206   : > { %v1118_v1 = vpack.c.bf16 %v733_v61, %v730_v35 }
 0x207   : > { %v1113_v2 = vpack.c.bf16 %v725_v0, %v722_v63 }
 0x208   : > { %1119 = vst [vmem:[%s335_s23] sm:$0xff] %v1118_v1  }
 0x209   : > { %1114 = vst [vmem:[%s328_s8] sm:$0xff] %v1113_v2  }
 0x20a   : > { %1337 = shalt.err (!%p1334_p10)
}
 0x20b   : > { %s1338_s10 = scalar_lea.hbm %s1779_s27, 128  ;;  %s1342_s0 = scalar_lea.hbm %s1872_s6, 256 }
 0x20c   : > { %p1339_p12 = scmp.ne.s32.totalorder %s1779_s27, %s1338_s10  ;;  %p1343_p8 = scmp.lt.u32.totalorder %s1779_s27, %s1872_s6 }
 0x20d   : > { %p1344_p11 = scmp.lt.u32.totalorder %s1342_s0, %s1338_s10  ;;  %p1346_p6 = scmp.lt.u32.totalorder %s1338_s10, %s1779_s27 }
 0x20e   : > { %p1340_p1 = pnand %p1339_p12, %p1888_p9 }
 0x20f   : > { %p1345_p0 = por %p1344_p11, %p1343_p8 }
 0x210   : > { %p1341_p3 = pneg %p1340_p1 }
 0x211   : > { %p1347_p13 = por %p1346_p6, %p1345_p0 }
 0x213   : > { %p1348_p2 = pnand %p1347_p13, %p1341_p3 }
 0x215   : > { %1351 = shalt.err (!%p1348_p2)
}
 0x216   : > { %s1890_s18 = smov 4   ;;  %s1891_s19 = smov 64  }
 0x217   : > { %1147 = dma.vmem_to_hbm [thread:$0]  (%p1888_p9), %s1773_s12, 128, %s1779_s27, %s1789_s11, %s1891_s19, %s1891_s19, %s1890_s18  }
 0x218   : > { %s1352_s22 = scalar_lea.vmem %s1781_s17, 128  ;;  %s1463_s21 = smov [#allocation8]  }
 0x219   : > { %p1353_p5 = scmp.ne.s32.totalorder %s1781_s17, %s1352_s22  ;;  %s1356_s10 = sshll.u32 %s1463_s21, 4  ;;  %s1357_s10 = int_to_ptr.vmem [resolvable:$false] %s1356_s10 }
 0x21a   : > { %s1358_s8 = scalar_lea.vmem %s1357_s10, 256  ;;  %p1359_p10 = scmp.lt.s32.totalorder %s1781_s17, %s1357_s10 }
 0x21b   : > { %p1354_p4 = pnand %p1353_p5, %p1888_p9  ;;  %p1360_p12 = scmp.lt.s32.totalorder %s1358_s8, %s1352_s22 }
 0x21d   : > { %p1355_p7 = pneg %p1354_p4  ;;  %p1361_p1 = por %p1360_p12, %p1359_p10 }
 0x21f   : > { %p1362_p3 = pnand %p1361_p1, %p1355_p7 }
 0x221   : > { %1365 = shalt.err (!%p1362_p3)
}
 0x222   : > { %s1366_s12 = scalar_lea.hbm %s1787_s20, 128  ;;  %s1370_s0 = scalar_lea.hbm %s1873_s7, 256 }
 0x223   : > { %p1367_p8 = scmp.ne.s32.totalorder %s1787_s20, %s1366_s12  ;;  %p1371_p6 = scmp.lt.u32.totalorder %s1787_s20, %s1873_s7 }
 0x224   : > { %p1372_p13 = scmp.lt.u32.totalorder %s1370_s0, %s1366_s12  ;;  %p1374_p5 = scmp.lt.u32.totalorder %s1366_s12, %s1787_s20 }
 0x225   : > { %p1368_p11 = pnand %p1367_p8, %p1888_p9 }
 0x226   : > { %p1373_p2 = por %p1372_p13, %p1371_p6 }
 0x227   : > { %p1369_p0 = pneg %p1368_p11 }
 0x228   : > { %p1375_p4 = por %p1374_p5, %p1373_p2 }
 0x22a   : > { %p1376_p7 = pnand %p1375_p4, %p1369_p0 }
 0x22c   : > { %1379 = shalt.err (!%p1376_p7)
}
 0x22d   : > { %1148 = dma.vmem_to_hbm [thread:$0]  (%p1888_p9), %s1781_s17, 128, %s1787_s20, %s1789_s11, %s1891_s19, %s1891_s19, %s1890_s18  }
 0x22e PF: > { %s830_s22 = sand.u32 1, %s1418_s24   ;;  %p1892_p10 = scmp.ne.s32.totalorder %s1884_s16, 0 }
 0x22f   : > { %p1893_p12 = scmp.ge.s32.totalorder %s1438_s29, 2  ;;  %s831_s21 = scalar_lea.sflag [#allocation4], %s830_s22 }
 0x231   : > { %p1157_p1 = pnand %p1893_p12, %p1892_p10 }
 0x233   : > { %1409 = dma.done.wait (!%p1157_p1), %s831_s21, 128  }
 0x234   : > { %1411 = vsyncadd (!%p1157_p1), %s831_s21, 4294967168  ;;  %s1894_s14 = sadd.s32 4294967294, %s1438_s29  }
 0x235   : > { %s839_s10 = sand.u32 1, %s1894_s14  }
 0x236   : > { %s840_s8 = scalar_lea.sflag [#allocation7], %s839_s10 }
 0x237   : > { %1413 = dma.done.wait (!%p1157_p1), %s840_s8, 256  }
 0x238   : > { %1415 = vsyncadd (!%p1157_p1), %s840_s8, 4294967040  ;;  %s27_s29 = sadd.s32 1, %s1438_s29   ;;  %s1895_s24 = smov %s1422_s25 }
 0x239   : > { %p24_p9 = scmp.ge.s32.totalorder %s27_s29, 4   ;;  %s1896_s25 = smov %s1426_s26 }
 0x23a   : > { %s1897_s26 = smov %s1566_s15  ;;  %s1898_s27 = smov %s1434_s28 }
 0x23b   : > { %s1899_s28 = smov %s1901_s9  ;;  %26 = sbr.rel (!%p24_p9) target bundleno = 10 (0xa), region = 132 }
 0x242   :  { %854 = vsyncpa [#allocation3], 1 }
 0x243   :  { %856 = vsyncpa [#allocation3 + $0x1], 1 }
 0x244   :  { %857 = vsyncpa [#allocation4], 1 }
 0x245   :  { %859 = vsyncpa [#allocation4 + $0x1], 1 }
 0x246   :  { %860 = vsyncpa [#allocation7], 1 }
 0x247   :  { %862 = vsyncpa [#allocation7 + $0x1], 1 }

</bundles_post_ra>
